<compile_context>
chip_gen: v5e
topology: v5e:2x2
jax: 0.10.0
libtpu: 0.0.40
codegen_flags: <defaults>
</compile_context>

<pallas_src>
import functools
import math

import jax
import jax.numpy as jnp
from jax.experimental import pallas as pl
from jax.experimental.pallas import tpu as pltpu

_LANE = 128
_SUBLANE = 8


def _iu_partials_kernel(fea_ref, inter_ref, union_ref, acc_ref, *,
                        fea_scale, fea_off, union_scale, union_off,
                        tile_rows, tiles_per_split, total_blocks, ragged_grid):
    s = pl.program_id(0)          # parallel split axis (2 TCs on v7x)
    j = pl.program_id(1)          # streaming reduction axis (arbitrary)

    @pl.when(j == 0)
    def _init():
        acc_ref[...] = jnp.zeros_like(acc_ref)

    def _accum():
        fea = fea_ref[...].astype(jnp.float32)        # (tile_rows, 128)
        inter = inter_ref[...].astype(jnp.float32)
        union = union_ref[...].astype(jnp.float32)

        # tanh(0.5*alpha*(x - beta)); sigmoid reconstruction happens in the
        # wrapper, so only one EUP push + one mul/sub per element here.
        t_fea = jnp.tanh(fea * fea_scale - fea_off)
        t_union = jnp.tanh(union * union_scale - union_off)

        def _vreg_partial(x):
            # (tile_rows, 128) -> (8, 128): whole-vreg adds (sublane-tile
            # preserving reshape, pure VPU); the single cross-lane reduce
            # happens once in the wrapper.
            return x.reshape(tile_rows // _SUBLANE, _SUBLANE, _LANE).sum(axis=0)

        acc_ref[0, 0, :, :] += _vreg_partial(inter * t_fea)   # tanh-num inter
        acc_ref[0, 1, :, :] += _vreg_partial(inter)           # den inter
        acc_ref[0, 2, :, :] += _vreg_partial(fea * t_union)   # tanh-num union
        acc_ref[0, 3, :, :] += _vreg_partial(fea)             # den union

    if ragged_grid:
        # Overhanging grid steps of the last split re-fetch a clamped block
        # (see index_map) but contribute nothing.
        pl.when(s * tiles_per_split + j < total_blocks)(_accum)
    else:
        _accum()


def _default_tiling():
    """Generation-aware defaults (tile_rows, num_splits)."""
    try:
        kind = jax.devices()[0].device_kind.lower()
    except Exception:  # pragma: no cover - non-TPU fallback
        kind = ""
    tile_rows = 2048 if "v5" in kind else 4096   # keep v5e under its 16 MiB scope
    num_splits = 2 if "v7" in kind else 1        # 2 TCs only on v7x
    return tile_rows, num_splits


def fea_organs_iu_loss(fea, fea_inter_label, fea_union_label,
                       inter_alpha, inter_beta, union_alpha, union_beta,
                       smooth=1e-40, *, tile_rows=None, num_splits=None):
    """Forward pass of fea_organs_IU_loss.  Inputs are (n, H, W) arrays."""
    assert fea.shape == fea_inter_label.shape == fea_union_label.shape
    n_elem = math.prod(fea.shape)
    assert n_elem > 0

    auto_tr, auto_ns = _default_tiling()
    tile_rows = auto_tr if tile_rows is None else int(tile_rows)
    num_splits = auto_ns if num_splits is None else int(num_splits)
    assert num_splits >= 1

    f32 = jnp.float32
    fea_scale = 0.5 * float(inter_alpha)
    fea_off = fea_scale * float(inter_beta)
    union_scale = 0.5 * float(union_alpha)
    union_off = union_scale * float(union_beta)

    fea_flat = jnp.ravel(fea)
    inter_flat = jnp.ravel(fea_inter_label)
    union_flat = jnp.ravel(fea_union_label)

    block_elems = tile_rows * _LANE

    if n_elem <= block_elems:
        # Whole input fits in one block: pad to a sublane-aligned slab (tiny,
        # zero padding is neutral for every accumulated sum).
        rows = pl.cdiv(n_elem, _LANE)
        rows_arr = max(_SUBLANE, pl.cdiv(rows, _SUBLANE) * _SUBLANE)
        pad = rows_arr * _LANE - n_elem

        def _prep(x):
            if pad:
                x = jnp.pad(x, (0, pad))
            return x.reshape(rows_arr, _LANE)

        fea_main = _prep(fea_flat)
        inter_main = _prep(inter_flat)
        union_main = _prep(union_flat)
        tile_rows_eff = rows_arr
        total_blocks = 1
        ns = 1
        n_tail = 0
        n_main = n_elem
    else:
        # 32-row alignment keeps non-full block shapes legal for f32/bf16/int8.
        assert tile_rows % 32 == 0, "tile_rows must be a multiple of 32"
        total_blocks = n_elem // block_elems
        n_main = total_blocks * block_elems
        n_tail = n_elem - n_main
        rows_main = total_blocks * tile_rows
        # Tile-aligned prefix only -- no full-array pad copy; the (<1 block)
        # tail is reduced in the wrapper below.
        fea_main = fea_flat[:n_main].reshape(rows_main, _LANE)
        inter_main = inter_flat[:n_main].reshape(rows_main, _LANE)
        union_main = union_flat[:n_main].reshape(rows_main, _LANE)
        tile_rows_eff = tile_rows
        ns = min(num_splits, total_blocks) if num_splits > 1 else 1

    tps = pl.cdiv(total_blocks, ns)
    ragged_grid = (ns * tps != total_blocks)

    kernel = functools.partial(
        _iu_partials_kernel,
        fea_scale=fea_scale, fea_off=fea_off,
        union_scale=union_scale, union_off=union_off,
        tile_rows=tile_rows_eff, tiles_per_split=tps,
        total_blocks=total_blocks, ragged_grid=ragged_grid)

    if ragged_grid:
        def in_idx(s, j):
            # Clamp overhanging steps of the last split to the final real
            # block (the kernel skips their accumulation).
            return (jnp.minimum(s * tps + j, total_blocks - 1), 0)
    else:
        def in_idx(s, j):
            return (s * tps + j, 0)

    in_spec = pl.BlockSpec((tile_rows_eff, _LANE), in_idx)
    # Output block depends only on the parallel index -> resident accumulator
    # across the reduction axis; one private partial row per split.
    out_spec = pl.BlockSpec((1, 4, _SUBLANE, _LANE), lambda s, j: (s, 0, 0, 0))

    # VMEM budget: double-buffered inputs (<= 8 B/elem) + elementwise temps.
    tile_bytes = tile_rows_eff * _LANE * 4
    vmem_limit = min(64 * 1024 * 1024, max(32 * 1024 * 1024, 14 * tile_bytes))

    bytes_accessed = (fea_main.size * fea_main.dtype.itemsize
                      + inter_main.size * inter_main.dtype.itemsize
                      + union_main.size * union_main.dtype.itemsize
                      + ns * 4 * _SUBLANE * _LANE * 4)
    cost = pl.CostEstimate(flops=14 * fea_main.size,
                           transcendentals=2 * fea_main.size,
                           bytes_accessed=bytes_accessed)

    partials = pl.pallas_call(
        kernel,
        out_shape=jax.ShapeDtypeStruct((ns, 4, _SUBLANE, _LANE), jnp.float32),
        grid_spec=pltpu.PrefetchScalarGridSpec(
            num_scalar_prefetch=0,
            grid=(ns, tps),
            in_specs=[in_spec, in_spec, in_spec],
            out_specs=out_spec,
        ),
        compiler_params=pltpu.CompilerParams(
            dimension_semantics=("parallel", "arbitrary"),
            vmem_limit_bytes=vmem_limit),
        cost_estimate=cost,
    )(fea_main, inter_main, union_main)

    sums = jnp.sum(partials, axis=(0, 2, 3))   # (4,) f32 -- tiny final reduce

    if n_tail:
        # Ragged tail (< one block): plain jnp, same tanh-form partials.
        tf = fea_flat[n_main:].astype(f32)
        ti = inter_flat[n_main:].astype(f32)
        tu = union_flat[n_main:].astype(f32)
        t_fea = jnp.tanh(tf * fea_scale - fea_off)
        t_union = jnp.tanh(tu * union_scale - union_off)
        sums = sums + jnp.stack([jnp.sum(ti * t_fea), jnp.sum(ti),
                                 jnp.sum(tf * t_union), jnp.sum(tf)])

    # Reconstruct sigmoid numerators: inter*sigmoid = 0.5*inter*tanh + 0.5*inter.
    # NOTE: smooth=1e-40 (module default) is subnormal in f32 and flushes to
    # zero on TPU; pass a normal-range epsilon if the zero-sum guard matters.
    smooth = jnp.float32(smooth)
    num_inter = 0.5 * sums[0] + 0.5 * sums[1]
    num_union = 0.5 * sums[2] + 0.5 * sums[3]
    loss_inter = -(num_inter / (sums[1] + smooth))
    loss_union = -(num_union / (sums[3] + smooth))
    return loss_inter + loss_union


def _reference(fea, inter_lbl, union_lbl, ia, ib, ua, ub, smooth=1e-40):
    n = fea.shape[0]
    fea_ = fea.reshape(n, -1).astype(jnp.float32)
    inter_ = inter_lbl.reshape(n, -1).astype(jnp.float32)
    union_ = union_lbl.reshape(n, -1).astype(jnp.float32)
    t_fea = 1.0 / (1.0 + jnp.exp(-ia * (fea_ - ib)))
    t_union = 1.0 / (1.0 + jnp.exp(-ua * (union_ - ub)))
    loss_inter = -(inter_ * t_fea).sum() / (inter_.sum() + smooth)
    loss_union = -(fea_ * t_union).sum() / (fea_.sum() + smooth)
    return loss_inter + loss_union


if __name__ == "__main__":
    # Hyperparameters (module __init__ args) -- deterministic in-script values.
    inter_alpha, inter_beta = 10.0, 0.5
    union_alpha, union_beta = 10.0, 0.5

    key = jax.random.PRNGKey(0)

    def make(shape, k, label_dtype):
        k1, k2, k3 = jax.random.split(k, 3)
        fea = jax.random.uniform(k1, shape, dtype=jnp.float32)
        # Binary masks kept narrow (bf16/int8) in HBM; cast to f32 in-kernel.
        inter = (jax.random.uniform(k2, shape) > 0.5).astype(label_dtype)
        union = (jax.random.uniform(k3, shape) > 0.5).astype(label_dtype)
        return fea, inter, union

    cases = [
        ((2, 16, 16), jnp.bfloat16, dict()),                            # single-tile path
        ((2, 48, 48), jnp.bfloat16, dict(tile_rows=32, num_splits=2)),  # wrapper tail, 1 block
        ((4, 64, 64), jnp.bfloat16, dict(tile_rows=32, num_splits=2)),  # even split, 2x2 blocks
        ((4, 64, 64), jnp.bfloat16, dict(tile_rows=32, num_splits=3)),  # ragged grid (clamp+when)
        ((3, 17, 19), jnp.bfloat16, dict()),                            # numel not 128-aligned
        ((4, 48, 48), jnp.int8,     dict(tile_rows=32, num_splits=2)),  # int8 labels + tail
    ]
    keys = jax.random.split(key, len(cases))
    for (shape, ldt, kw), k in zip(cases, keys):
        fea, inter, union = make(shape, k, ldt)
        out = fea_organs_iu_loss(fea, inter, union,
                                 inter_alpha, inter_beta,
                                 union_alpha, union_beta, **kw)
        out = jax.block_until_ready(out)
        ref = _reference(fea, inter, union,
                         inter_alpha, inter_beta, union_alpha, union_beta)
        assert jnp.allclose(out, ref, rtol=1e-4, atol=1e-5), (shape, out, ref)

    print("KERNEL_OK")
</pallas_src>

<mosaic_0001>
module attributes {stable_mosaic.version = 11 : i64} {
  func.func @_iu_partials_kernel(%arg0: i32, %arg1: i32, %arg2: memref<8x128xf32, #tpu.memory_space<vmem>>, %arg3: memref<8x128xbf16, #tpu.memory_space<vmem>>, %arg4: memref<8x128xbf16, #tpu.memory_space<vmem>>, %arg5: memref<1x4x8x128xf32, #tpu.memory_space<vmem>>) attributes {dimension_semantics = [#tpu.dimension_semantics<parallel>, #tpu.dimension_semantics<arbitrary>], iteration_bounds = array<i64: 1, 1>, scalar_prefetch = 0 : i64, scratch_operands = 0 : i64, tpu.core_type = #tpu.core_type<tc>, window_params = [{transform_indices = @transform_0, window_bounds = array<i64: 8, 128>}, {transform_indices = @transform_1, window_bounds = array<i64: 8, 128>}, {transform_indices = @transform_2, window_bounds = array<i64: 8, 128>}, {transform_indices = @transform_3, window_bounds = array<i64: 1, 4, 8, 128>}]} {
    %c0_i32 = arith.constant 0 : i32
    %0 = arith.cmpi eq, %arg1, %c0_i32 : i32
    %1 = arith.extui %0 : i1 to i32
    %c0_i32_0 = arith.constant 0 : i32
    %2 = arith.cmpi ne, %1, %c0_i32_0 : i32
    scf.if %2 {
      %cst_42 = arith.constant 0.000000e+00 : f32
      %52 = vector.broadcast %cst_42 : f32 to vector<1x4x8x128xf32>
      %c0_43 = arith.constant 0 : index
      %c0_44 = arith.constant 0 : index
      %c0_45 = arith.constant 0 : index
      %c0_46 = arith.constant 0 : index
      %53 = vector.load %arg5[%c0_43, %c0_44, %c0_45, %c0_46] : memref<1x4x8x128xf32, #tpu.memory_space<vmem>>, vector<1x4x8x128xf32>
      tpu.vector_store %arg5[%c0_43, %c0_44, %c0_45, %c0_46], %52 {strides = array<i32>} : memref<1x4x8x128xf32, #tpu.memory_space<vmem>>, vector<1x4x8x128xf32>,
    } else {
    }
    %c0 = arith.constant 0 : index
    %c0_1 = arith.constant 0 : index
    %3 = vector.load %arg2[%c0, %c0_1] : memref<8x128xf32, #tpu.memory_space<vmem>>, vector<8x128xf32>
    %c0_2 = arith.constant 0 : index
    %c0_3 = arith.constant 0 : index
    %4 = vector.load %arg3[%c0_2, %c0_3] : memref<8x128xbf16, #tpu.memory_space<vmem>>, vector<8x128xbf16>
    %5 = arith.extf %4 : vector<8x128xbf16> to vector<8x128xf32>
    %c0_4 = arith.constant 0 : index
    %c0_5 = arith.constant 0 : index
    %6 = vector.load %arg4[%c0_4, %c0_5] : memref<8x128xbf16, #tpu.memory_space<vmem>>, vector<8x128xbf16>
    %7 = arith.extf %6 : vector<8x128xbf16> to vector<8x128xf32>
    %cst = arith.constant 5.000000e+00 : f32
    %8 = vector.broadcast %cst : f32 to vector<8x128xf32>
    %9 = arith.mulf %3, %8 : vector<8x128xf32>
    %cst_6 = arith.constant 2.500000e+00 : f32
    %10 = vector.broadcast %cst_6 : f32 to vector<8x128xf32>
    %11 = arith.subf %9, %10 : vector<8x128xf32>
    %12 = math.tanh %11 : vector<8x128xf32>
    %cst_7 = arith.constant 5.000000e+00 : f32
    %13 = vector.broadcast %cst_7 : f32 to vector<8x128xf32>
    %14 = arith.mulf %7, %13 : vector<8x128xf32>
    %cst_8 = arith.constant 2.500000e+00 : f32
    %15 = vector.broadcast %cst_8 : f32 to vector<8x128xf32>
    %16 = arith.subf %14, %15 : vector<8x128xf32>
    %17 = math.tanh %16 : vector<8x128xf32>
    %c0_9 = arith.constant 0 : index
    %c0_10 = arith.constant 0 : index
    %c0_11 = arith.constant 0 : index
    %c0_12 = arith.constant 0 : index
    %18 = vector.load %arg5[%c0_9, %c0_10, %c0_11, %c0_12] : memref<1x4x8x128xf32, #tpu.memory_space<vmem>>, vector<1x1x8x128xf32>
    %19 = vector.shape_cast %18 : vector<1x1x8x128xf32> to vector<8x128xf32>
    %20 = arith.mulf %5, %12 : vector<8x128xf32>
    %21 = vector.shape_cast %20 : vector<8x128xf32> to vector<1x8x128xf32>
    %cst_13 = arith.constant dense<0.000000e+00> : vector<8x128xf32>
    %22 = vector.multi_reduction <add>, %21, %cst_13 [0] : vector<1x8x128xf32> to vector<8x128xf32>
    %23 = arith.addf %19, %22 : vector<8x128xf32>
    %c0_14 = arith.constant 0 : index
    %c0_15 = arith.constant 0 : index
    %c0_16 = arith.constant 0 : index
    %c0_17 = arith.constant 0 : index
    %24 = vector.load %arg5[%c0_14, %c0_15, %c0_16, %c0_17] : memref<1x4x8x128xf32, #tpu.memory_space<vmem>>, vector<1x1x8x128xf32>
    %25 = vector.shape_cast %24 : vector<1x1x8x128xf32> to vector<8x128xf32>
    %26 = vector.shape_cast %23 : vector<8x128xf32> to vector<1x1x8x128xf32>
    tpu.vector_store %arg5[%c0_14, %c0_15, %c0_16, %c0_17], %26 {strides = array<i32>} : memref<1x4x8x128xf32, #tpu.memory_space<vmem>>, vector<1x1x8x128xf32>,
    %c0_18 = arith.constant 0 : index
    %c1 = arith.constant 1 : index
    %c0_19 = arith.constant 0 : index
    %c0_20 = arith.constant 0 : index
    %27 = vector.load %arg5[%c0_18, %c1, %c0_19, %c0_20] : memref<1x4x8x128xf32, #tpu.memory_space<vmem>>, vector<1x1x8x128xf32>
    %28 = vector.shape_cast %27 : vector<1x1x8x128xf32> to vector<8x128xf32>
    %29 = vector.shape_cast %5 : vector<8x128xf32> to vector<1x8x128xf32>
    %cst_21 = arith.constant dense<0.000000e+00> : vector<8x128xf32>
    %30 = vector.multi_reduction <add>, %29, %cst_21 [0] : vector<1x8x128xf32> to vector<8x128xf32>
    %31 = arith.addf %28, %30 : vector<8x128xf32>
    %c0_22 = arith.constant 0 : index
    %c1_23 = arith.constant 1 : index
    %c0_24 = arith.constant 0 : index
    %c0_25 = arith.constant 0 : index
    %32 = vector.load %arg5[%c0_22, %c1_23, %c0_24, %c0_25] : memref<1x4x8x128xf32, #tpu.memory_space<vmem>>, vector<1x1x8x128xf32>
    %33 = vector.shape_cast %32 : vector<1x1x8x128xf32> to vector<8x128xf32>
    %34 = vector.shape_cast %31 : vector<8x128xf32> to vector<1x1x8x128xf32>
    tpu.vector_store %arg5[%c0_22, %c1_23, %c0_24, %c0_25], %34 {strides = array<i32>} : memref<1x4x8x128xf32, #tpu.memory_space<vmem>>, vector<1x1x8x128xf32>,
    %c0_26 = arith.constant 0 : index
    %c2 = arith.constant 2 : index
    %c0_27 = arith.constant 0 : index
    %c0_28 = arith.constant 0 : index
    %35 = vector.load %arg5[%c0_26, %c2, %c0_27, %c0_28] : memref<1x4x8x128xf32, #tpu.memory_space<vmem>>, vector<1x1x8x128xf32>
    %36 = vector.shape_cast %35 : vector<1x1x8x128xf32> to vector<8x128xf32>
    %37 = arith.mulf %3, %17 : vector<8x128xf32>
    %38 = vector.shape_cast %37 : vector<8x128xf32> to vector<1x8x128xf32>
    %cst_29 = arith.constant dense<0.000000e+00> : vector<8x128xf32>
    %39 = vector.multi_reduction <add>, %38, %cst_29 [0] : vector<1x8x128xf32> to vector<8x128xf32>
    %40 = arith.addf %36, %39 : vector<8x128xf32>
    %c0_30 = arith.constant 0 : index
    %c2_31 = arith.constant 2 : index
    %c0_32 = arith.constant 0 : index
    %c0_33 = arith.constant 0 : index
    %41 = vector.load %arg5[%c0_30, %c2_31, %c0_32, %c0_33] : memref<1x4x8x128xf32, #tpu.memory_space<vmem>>, vector<1x1x8x128xf32>
    %42 = vector.shape_cast %41 : vector<1x1x8x128xf32> to vector<8x128xf32>
    %43 = vector.shape_cast %40 : vector<8x128xf32> to vector<1x1x8x128xf32>
    tpu.vector_store %arg5[%c0_30, %c2_31, %c0_32, %c0_33], %43 {strides = array<i32>} : memref<1x4x8x128xf32, #tpu.memory_space<vmem>>, vector<1x1x8x128xf32>,
    %c0_34 = arith.constant 0 : index
    %c3 = arith.constant 3 : index
    %c0_35 = arith.constant 0 : index
    %c0_36 = arith.constant 0 : index
    %44 = vector.load %arg5[%c0_34, %c3, %c0_35, %c0_36] : memref<1x4x8x128xf32, #tpu.memory_space<vmem>>, vector<1x1x8x128xf32>
    %45 = vector.shape_cast %44 : vector<1x1x8x128xf32> to vector<8x128xf32>
    %46 = vector.shape_cast %3 : vector<8x128xf32> to vector<1x8x128xf32>
    %cst_37 = arith.constant dense<0.000000e+00> : vector<8x128xf32>
    %47 = vector.multi_reduction <add>, %46, %cst_37 [0] : vector<1x8x128xf32> to vector<8x128xf32>
    %48 = arith.addf %45, %47 : vector<8x128xf32>
    %c0_38 = arith.constant 0 : index
    %c3_39 = arith.constant 3 : index
    %c0_40 = arith.constant 0 : index
    %c0_41 = arith.constant 0 : index
    %49 = vector.load %arg5[%c0_38, %c3_39, %c0_40, %c0_41] : memref<1x4x8x128xf32, #tpu.memory_space<vmem>>, vector<1x1x8x128xf32>
    %50 = vector.shape_cast %49 : vector<1x1x8x128xf32> to vector<8x128xf32>
    %51 = vector.shape_cast %48 : vector<8x128xf32> to vector<1x1x8x128xf32>
    tpu.vector_store %arg5[%c0_38, %c3_39, %c0_40, %c0_41], %51 {strides = array<i32>} : memref<1x4x8x128xf32, #tpu.memory_space<vmem>>, vector<1x1x8x128xf32>,
    return
  }
  func.func @transform_0(%arg0: i32, %arg1: i32) -> (i32, i32) {
    %c1_i32 = arith.constant 1 : i32
    %0 = arith.muli %arg0, %c1_i32 : i32
    %1 = arith.addi %0, %arg1 : i32
    %c0_i32 = arith.constant 0 : i32
    %c0_i32_0 = arith.constant 0 : i32
    return %1, %c0_i32 : i32, i32
  }
  func.func @transform_1(%arg0: i32, %arg1: i32) -> (i32, i32) {
    %c1_i32 = arith.constant 1 : i32
    %0 = arith.muli %arg0, %c1_i32 : i32
    %1 = arith.addi %0, %arg1 : i32
    %c0_i32 = arith.constant 0 : i32
    %c0_i32_0 = arith.constant 0 : i32
    return %1, %c0_i32 : i32, i32
  }
  func.func @transform_2(%arg0: i32, %arg1: i32) -> (i32, i32) {
    %c1_i32 = arith.constant 1 : i32
    %0 = arith.muli %arg0, %c1_i32 : i32
    %1 = arith.addi %0, %arg1 : i32
    %c0_i32 = arith.constant 0 : i32
    %c0_i32_0 = arith.constant 0 : i32
    return %1, %c0_i32 : i32, i32
  }
  func.func @transform_3(%arg0: i32, %arg1: i32) -> (i32, i32, i32, i32) {
    %c0_i32 = arith.constant 0 : i32
    %c0_i32_0 = arith.constant 0 : i32
    %c0_i32_1 = arith.constant 0 : i32
    %c0_i32_2 = arith.constant 0 : i32
    return %arg0, %c0_i32, %c0_i32_0, %c0_i32_1 : i32, i32, i32, i32
  }
}

</mosaic_0001>

<bundles_post_ra>
// kernel: tpu_custom_call.1
= control target key start
LH: loop header
LB: loop body
LE: loop exit
PB: predicated region body
PF: predicated region fallthrough
CT: control target
= control target key end

     0   :  { %8 = vsyncpa [#allocation3], 0  ;;  %s281_s0 = inlined_call_operand.hbm [shape: f32[8,128], index: 0, kind: input, shape index: {}]   ;;  %s282_s1 = inlined_call_operand.hbm [shape: bf16[8,128], index: 1, kind: input, shape index: {}]   ;;  %s283_s2 = inlined_call_operand.hbm [shape: bf16[8,128], index: 2, kind: input, shape index: {}]   ;;  %s284_s3 = inlined_call_operand.hbm [shape: f32[1,4,8,128], index: 3, kind: output, shape index: {}]  }
   0x1   :  { %9 = vsyncpa [#allocation6], 0  ;;  %s33_s14 = sshll.u32 %s282_s1, 4  ;;  %s34_s14 = int_to_ptr.hbm [resolvable:$true] %s33_s14 }
   0x2   :  { %10 = vsyncpa [#allocation4], 0  ;;  %s243_s15 = smov [#allocation5]   ;;  %s19_s19 = sshll.u32 %s281_s0, 4  ;;  %s20_s19 = int_to_ptr.hbm [resolvable:$true] %s19_s19 }
   0x3   :  { %s35_s16 = sshll.u32 %s243_s15, 4  ;;  %s244_s20 = smov [#allocation2]   ;;  %s36_s16 = int_to_ptr.vmem [resolvable:$true] %s35_s16 }
   0x4   :  { %38 = dma.hbm_to_vmem [thread:$0]  %s34_s14, 64, %s36_s16, [#allocation6]  }
   0x5   :  { %s21_s21 = sshll.u32 %s244_s20, 4  ;;  %s47_s24 = sshll.u32 %s283_s2, 4  ;;  %s22_s21 = int_to_ptr.vmem [resolvable:$true] %s21_s21  ;;  %s48_s24 = int_to_ptr.hbm [resolvable:$true] %s47_s24 }
   0x6   :  { %24 = dma.hbm_to_vmem [thread:$0]  %s20_s19, 128, %s22_s21, [#allocation3]  }
   0x7   :  { %s245_s1 = smov [#allocation7]  }
   0x8   :  { %s49_s25 = sshll.u32 %s245_s1, 4  ;;  %s50_s25 = int_to_ptr.vmem [resolvable:$true] %s49_s25 }
   0x9   :  { %52 = dma.hbm_to_vmem [thread:$0]  %s48_s24, 64, %s50_s25, [#allocation6]  }
   0xa   :  { %237 = dma.done.wait [#allocation3], 128  }
   0xb   :  { %238 = vsyncadd [#allocation3], 4294967168 }
   0xc   :  { %239 = dma.done.wait [#allocation6], 128  }
   0xd   :  { %240 = vsyncadd [#allocation6], 4294967168  ;;  %v76_v0 = vld [vmem:[#allocation2] sm:$0xff]  ;;  %v77_v1 = vld [vmem:[#allocation5] sm:$0xf]  ;;  %s246_s0 = smov [#allocation8]  }
   0xe   :  { %v79_v2 = vld [vmem:[#allocation7] sm:$0xf]  ;;  %v78_v3 = vunpack.c.l.bf16 %v77_v1  ;;  %v81_v4 = vmul.f32 5.0, %v76_v0  ;;  %107 = vst [vmem:[#allocation8 + $0x18] sm:$0xff] %v76_v0  ;;  %s112_s2 = sshll.u32 %s246_s0, 4  ;;  %s114_s28 = sshll.u32 %s284_s3, 4  ;;  %s113_s2 = int_to_ptr.vmem [resolvable:$true] %s112_s2  ;;  %s115_s28 = int_to_ptr.hbm [resolvable:$true] %s114_s28 }
   0xf   :  { %v80_v5 = vunpack.c.l.bf16 %v79_v2  ;;  %s247_s29 = smov 128   ;;  %s248_s30 = smov 8  }
  0x10   :  { %v128_v6 = vadd.f32 -2.5, %v81_v4  ;;  %96 = vst [vmem:[#allocation8 + $0x8] sm:$0xff] %v78_v3 }
  0x11   :  { %v84_v7 = vmul.f32 5.0, %v80_v5 }
  0x12   :  { %137 = vtanh.f32 %v128_v6 }
  0x13   :  { %v129_v8 = vadd.f32 -2.5, %v84_v7 }
  0x15   :  { %139 = vtanh.f32 %v129_v8 }
  0x18   :  { %v138_v9 = vpop.eup %137 }
  0x19   :  { %v88_v10 = vmul.f32 %v138_v9, %v78_v3 }
  0x1b   :  { %v140_v11 = vpop.eup %139  ;;  %91 = vst [vmem:[#allocation8] sm:$0xff] %v88_v10 }
  0x1c   :  { %v99_v12 = vmul.f32 %v140_v11, %v76_v0 }
  0x1e   :  { %102 = vst [vmem:[#allocation8 + $0x10] sm:$0xff] %v99_v12 }
  0x1f   :  { %120 = dma.vmem_to_hbm [thread:$0]  %s113_s2, 512, %s115_s28, [#allocation4], %s247_s29, %s247_s29, %s248_s30  }
  0x20   :  { %241 = dma.done.wait [#allocation4], 512  }
  0x21   :  { %242 = vsyncadd [#allocation4], 4294966784 }
  0x22   :  { %125 = vsyncpa [#allocation3], 1 }
  0x23   :  { %126 = vsyncpa [#allocation6], 1 }
  0x24   :  { %127 = vsyncpa [#allocation4], 1 }

</bundles_post_ra>
